<compile_context>
chip_gen: v7x
topology: tpu7x:2x2x1
jax: 0.10.0
libtpu: 0.0.40
codegen_flags: <defaults>
</compile_context>

<pallas_src>
import math

import jax
import jax.numpy as jnp
from jax.experimental import pallas as pl
from jax.experimental.pallas import tpu as pltpu


def _round_up(x, m):
    return ((x + m - 1) // m) * m


# Force >= 2 grid steps (megacore sharding on v7x) once the batch is big enough that
# each half-tile still amortises the ~0.35 us per-step overhead.
_MIN_ROWS_FOR_SPLIT = 1024


def time_encoder_kernel(t_ref, w1_ref, b1_ref, w2_ref, b2_ref,
                        w3_ref, b3_ref, w4_ref, b4_ref, o_ref):
    mm_dt = w2_ref.dtype    # MXU operand dtype (bf16 fast path / f32 tight path)
    act_dt = b2_ref.dtype   # elementwise/activation dtype for layers 2-3

    t = t_ref[...]                                          # [TB, 1] f32
    # Layer 1: Linear(1 -> 64). Inner dim is 1, so t @ W1 == t * W1 (broadcast);
    # keep it on the VPU in f32, then downcast once to the MXU operand dtype.
    h = jnp.maximum(t * w1_ref[...] + b1_ref[...], 0.0)     # [TB, 64] f32
    h = h.astype(mm_dt)

    # Layer 2: Linear(64 -> 128) + ReLU.  f32 MXU accumulation, then bias/ReLU in
    # act_dt (bf16 on v6e/v7x halves vld/vst + spill traffic of the intermediates).
    h = jnp.dot(h, w2_ref[...], preferred_element_type=jnp.float32)     # [TB, 128] f32
    h = jnp.maximum(h.astype(act_dt) + b2_ref[...], 0.0)                # [TB, 128] act_dt

    # Layer 3: Linear(128 -> 256) + ReLU.
    h = jnp.dot(h.astype(mm_dt), w3_ref[...],
                preferred_element_type=jnp.float32)                     # [TB, 256] f32
    h = jnp.maximum(h.astype(act_dt) + b3_ref[...], 0.0)                # [TB, 256] act_dt

    # Layer 4: Linear(256 -> out_pad).  Lane-dense (multiple of 128) -> unmasked vst.
    out = jnp.dot(h.astype(mm_dt), w4_ref[...],
                  preferred_element_type=jnp.float32) + b4_ref[...]     # [TB, out_pad] f32
    o_ref[...] = out.astype(o_ref.dtype)


def time_encoder_forward(t, params, *, tile_b=4096,
                         matmul_dtype=jnp.bfloat16,
                         act_dtype=jnp.bfloat16,
                         out_dtype=jnp.float32):
    """t: [B, 1] float32 -> [B, output_dim] (out_dtype).

    matmul_dtype : MXU operand dtype (bf16 is fast on v5e/v6e/v7x; f32 = bit-tight).
    act_dtype    : dtype of the layer-2/3 intermediate activations (bf16 on v6e/v7x;
                   use f32 on v5e, which has no bf16 VPU, or for exact reference).
    out_dtype    : output store dtype (bf16 halves HBM writeback if the consumer allows).
    """
    (w1, b1), (w2, b2), (w3, b3), (w4, b4) = params
    t = t.astype(jnp.float32)
    B = t.shape[0]
    out_dim = w4.shape[1]

    # --- lane-dense final layer: zero-pad out_dim up to a multiple of 128 lanes ---
    out_pad = _round_up(max(out_dim, 128), 128)
    if out_pad != out_dim:
        w4p = jnp.zeros((w4.shape[0], out_pad), jnp.float32).at[:, :out_dim].set(w4)
        b4p = jnp.zeros((1, out_pad), jnp.float32).at[:, :out_dim].set(b4)
    else:
        w4p, b4p = w4, b4

    # --- cast weights/biases once, outside the kernel ---
    w2c = w2.astype(matmul_dtype)
    w3c = w3.astype(matmul_dtype)
    w4c = w4p.astype(matmul_dtype)
    b2c = b2.astype(act_dtype)
    b3c = b3.astype(act_dtype)

    # --- bounded batch padding + megacore-friendly grid ---
    steps = max(1, pl.cdiv(B, tile_b))
    if steps == 1 and B >= _MIN_ROWS_FOR_SPLIT:
        steps = 2                                # let v7x's 2 TCs each take a tile
    tb = _round_up(pl.cdiv(B, steps), 8)         # padding waste <= 8*steps rows
    B_pad = steps * tb
    if B_pad != B:
        t_in = jnp.zeros((B_pad, 1), jnp.float32).at[:B, :].set(t)
    else:
        t_in = t

    grid = (steps,)

    flops = 2 * B_pad * (1 * 64 + 64 * 128 + 128 * 256 + 256 * out_pad)
    weight_bytes = sum(int(a.size) * a.dtype.itemsize
                       for a in (w1, b1, w2c, b2c, w3c, b3c, w4c, b4p))
    bytes_accessed = (4 * B_pad                                   # t (f32)
                      + B_pad * out_pad * jnp.dtype(out_dtype).itemsize
                      + weight_bytes)

    def full_spec(shape):
        # Whole (small) array resident in VMEM; block index is constant across the
        # grid so Pallas does not re-DMA it per step.
        return pl.BlockSpec(shape, lambda i: tuple(0 for _ in shape))

    out = pl.pallas_call(
        time_encoder_kernel,
        out_shape=jax.ShapeDtypeStruct((B_pad, out_pad), out_dtype),
        grid_spec=pltpu.PrefetchScalarGridSpec(
            num_scalar_prefetch=0,
            grid=grid,
            in_specs=[
                pl.BlockSpec((tb, 1), lambda i: (i, 0)),          # t tile
                full_spec(w1.shape), full_spec(b1.shape),
                full_spec(w2c.shape), full_spec(b2c.shape),
                full_spec(w3c.shape), full_spec(b3c.shape),
                full_spec(w4c.shape), full_spec(b4p.shape),
            ],
            out_specs=pl.BlockSpec((tb, out_pad), lambda i: (i, 0)),
        ),
        compiler_params=pltpu.CompilerParams(
            dimension_semantics=("parallel",)),
        cost_estimate=pl.CostEstimate(
            flops=flops, transcendentals=0, bytes_accessed=bytes_accessed),
    )(t_in, w1, b1, w2c, b2c, w3c, b3c, w4c, b4p)

    # Undo batch padding and lane padding outside the kernel.
    return out[:B, :out_dim]


def xavier_uniform(key, fan_in, fan_out):
    # Matches nn.init.xavier_uniform_ (gain=1): U(-a, a), a = sqrt(6/(fan_in+fan_out)).
    a = math.sqrt(6.0 / (fan_in + fan_out))
    # Stored as [in, out] (transposed from PyTorch's [out, in]); the distribution is
    # symmetric so this is an equally valid deterministic xavier init.  If loading a
    # torch checkpoint, transpose its weight matrices into this layout.
    return jax.random.uniform(key, (fan_in, fan_out), jnp.float32, -a, a)


def init_time_encoder_params(key, output_dim):
    dims = [(1, 64), (64, 128), (128, 256), (256, output_dim)]
    keys = jax.random.split(key, len(dims))
    params = []
    for k, (fi, fo) in zip(keys, dims):
        w = xavier_uniform(k, fi, fo)
        b = jnp.zeros((1, fo), jnp.float32)  # only weights (dim>1) get xavier reset
        params.append((w, b))
    return params


def time_encoder_ref(t, params):
    (w1, b1), (w2, b2), (w3, b3), (w4, b4) = params
    h = jnp.maximum(t @ w1 + b1, 0.0)
    h = jnp.maximum(h @ w2 + b2, 0.0)
    h = jnp.maximum(h @ w3 + b3, 0.0)
    return h @ w4 + b4


if __name__ == "__main__":
    key = jax.random.PRNGKey(0)
    k_param, k_t1, k_t2, k_t3 = jax.random.split(key, 4)

    output_dim = 32
    params = init_time_encoder_params(k_param, output_dim)

    # Small case (B=8): exercises lane-padding of the 32-wide output.
    B1 = 8
    t1 = jax.random.uniform(k_t1, (B1, 1), jnp.float32)
    ref1 = time_encoder_ref(t1, params)

    # Bit-tight f32 path: must match the pure-JAX reference tightly.
    out_f32 = jax.block_until_ready(
        time_encoder_forward(t1, params,
                             matmul_dtype=jnp.float32, act_dtype=jnp.float32))
    assert out_f32.shape == (B1, output_dim)
    assert jnp.allclose(out_f32, ref1, atol=1e-5, rtol=1e-5), "f32 mismatch vs. reference"

    # Default fast path (bf16 MXU operands + bf16 intermediates): relaxed tolerance.
    out_fast = jax.block_until_ready(time_encoder_forward(t1, params))
    assert out_fast.shape == (B1, output_dim)
    assert jnp.allclose(out_fast, ref1, atol=5e-2, rtol=5e-2), "bf16 mismatch vs. reference"

    # Ragged / multi-step grid with bounded padding (steps=4, tb=56, pad=24 rows).
    B2 = 200
    t2 = jax.random.uniform(k_t2, (B2, 1), jnp.float32)
    out2 = jax.block_until_ready(
        time_encoder_forward(t2, params, tile_b=64,
                             matmul_dtype=jnp.float32, act_dtype=jnp.float32))
    ref2 = time_encoder_ref(t2, params)
    assert out2.shape == (B2, output_dim)
    assert jnp.allclose(out2, ref2, atol=1e-5, rtol=1e-5), "ragged-batch mismatch vs. reference"

    # Larger batch on the default path: exercises the forced >=2-step (megacore) grid
    # split and the big default tile.
    B3 = 2048
    t3 = jax.random.uniform(k_t3, (B3, 1), jnp.float32)
    out3 = jax.block_until_ready(time_encoder_forward(t3, params))
    ref3 = time_encoder_ref(t3, params)
    assert out3.shape == (B3, output_dim)
    assert jnp.allclose(out3, ref3, atol=5e-2, rtol=5e-2), "large-batch mismatch vs. reference"

    print("KERNEL_OK")
</pallas_src>

<mosaic_0001>
module attributes {stable_mosaic.version = 11 : i64} {
  func.func @time_encoder_kernel(%arg0: i32, %arg1: memref<8x1xf32, #tpu.memory_space<vmem>>, %arg2: memref<1x64xf32, #tpu.memory_space<vmem>>, %arg3: memref<1x64xf32, #tpu.memory_space<vmem>>, %arg4: memref<64x128xf32, #tpu.memory_space<vmem>>, %arg5: memref<1x128xf32, #tpu.memory_space<vmem>>, %arg6: memref<128x256xf32, #tpu.memory_space<vmem>>, %arg7: memref<1x256xf32, #tpu.memory_space<vmem>>, %arg8: memref<256x128xf32, #tpu.memory_space<vmem>>, %arg9: memref<1x128xf32, #tpu.memory_space<vmem>>, %arg10: memref<8x128xf32, #tpu.memory_space<vmem>>) attributes {dimension_semantics = [#tpu.dimension_semantics<parallel>], iteration_bounds = array<i64: 1>, scalar_prefetch = 0 : i64, scratch_operands = 0 : i64, tpu.core_type = #tpu.core_type<tc>, window_params = [{transform_indices = @transform_0, window_bounds = array<i64: 8, 1>}, {pipeline_mode = #tpu.pipeline_mode<synchronous>, transform_indices = @transform_1, window_bounds = array<i64: 1, 64>}, {pipeline_mode = #tpu.pipeline_mode<synchronous>, transform_indices = @transform_2, window_bounds = array<i64: 1, 64>}, {pipeline_mode = #tpu.pipeline_mode<synchronous>, transform_indices = @transform_3, window_bounds = array<i64: 64, 128>}, {pipeline_mode = #tpu.pipeline_mode<synchronous>, transform_indices = @transform_4, window_bounds = array<i64: 1, 128>}, {pipeline_mode = #tpu.pipeline_mode<synchronous>, transform_indices = @transform_5, window_bounds = array<i64: 128, 256>}, {pipeline_mode = #tpu.pipeline_mode<synchronous>, transform_indices = @transform_6, window_bounds = array<i64: 1, 256>}, {pipeline_mode = #tpu.pipeline_mode<synchronous>, transform_indices = @transform_7, window_bounds = array<i64: 256, 128>}, {pipeline_mode = #tpu.pipeline_mode<synchronous>, transform_indices = @transform_8, window_bounds = array<i64: 1, 128>}, {transform_indices = @transform_9, window_bounds = array<i64: 8, 128>}]} {
    %c0 = arith.constant 0 : index
    %c0_0 = arith.constant 0 : index
    %0 = vector.load %arg1[%c0, %c0_0] : memref<8x1xf32, #tpu.memory_space<vmem>>, vector<8x1xf32>
    %c0_1 = arith.constant 0 : index
    %c0_2 = arith.constant 0 : index
    %1 = vector.load %arg2[%c0_1, %c0_2] : memref<1x64xf32, #tpu.memory_space<vmem>>, vector<1x64xf32>
    %2 = vector.broadcast %0 : vector<8x1xf32> to vector<8x64xf32>
    %3 = vector.broadcast %1 : vector<1x64xf32> to vector<8x64xf32>
    %4 = arith.mulf %2, %3 : vector<8x64xf32>
    %c0_3 = arith.constant 0 : index
    %c0_4 = arith.constant 0 : index
    %5 = vector.load %arg3[%c0_3, %c0_4] : memref<1x64xf32, #tpu.memory_space<vmem>>, vector<1x64xf32>
    %6 = vector.broadcast %5 : vector<1x64xf32> to vector<8x64xf32>
    %7 = arith.addf %4, %6 : vector<8x64xf32>
    %cst = arith.constant 0.000000e+00 : f32
    %8 = vector.broadcast %cst : f32 to vector<8x64xf32>
    %9 = arith.maximumf %7, %8 : vector<8x64xf32>
    %c0_5 = arith.constant 0 : index
    %c0_6 = arith.constant 0 : index
    %10 = vector.load %arg4[%c0_5, %c0_6] : memref<64x128xf32, #tpu.memory_space<vmem>>, vector<64x128xf32>
    %cst_7 = arith.constant dense<0.000000e+00> : vector<8x128xf32>
    %11 = tpu.matmul %9, %10, %cst_7 {dimension_numbers = #tpu.dot_dimension_numbers<[1], [0], [0], [1], [0, 0, 1, 1], [], []>} : vector<8x64xf32>, vector<64x128xf32>, vector<8x128xf32> -> vector<8x128xf32>
    %c0_8 = arith.constant 0 : index
    %c0_9 = arith.constant 0 : index
    %12 = vector.load %arg5[%c0_8, %c0_9] : memref<1x128xf32, #tpu.memory_space<vmem>>, vector<1x128xf32>
    %13 = vector.broadcast %12 : vector<1x128xf32> to vector<8x128xf32>
    %14 = arith.addf %11, %13 : vector<8x128xf32>
    %cst_10 = arith.constant 0.000000e+00 : f32
    %15 = vector.broadcast %cst_10 : f32 to vector<8x128xf32>
    %16 = arith.maximumf %14, %15 : vector<8x128xf32>
    %c0_11 = arith.constant 0 : index
    %c0_12 = arith.constant 0 : index
    %17 = vector.load %arg6[%c0_11, %c0_12] : memref<128x256xf32, #tpu.memory_space<vmem>>, vector<128x256xf32>
    %cst_13 = arith.constant dense<0.000000e+00> : vector<8x256xf32>
    %18 = tpu.matmul %16, %17, %cst_13 {dimension_numbers = #tpu.dot_dimension_numbers<[1], [0], [0], [1], [0, 0, 1, 1], [], []>} : vector<8x128xf32>, vector<128x256xf32>, vector<8x256xf32> -> vector<8x256xf32>
    %c0_14 = arith.constant 0 : index
    %c0_15 = arith.constant 0 : index
    %19 = vector.load %arg7[%c0_14, %c0_15] : memref<1x256xf32, #tpu.memory_space<vmem>>, vector<1x256xf32>
    %20 = vector.broadcast %19 : vector<1x256xf32> to vector<8x256xf32>
    %21 = arith.addf %18, %20 : vector<8x256xf32>
    %cst_16 = arith.constant 0.000000e+00 : f32
    %22 = vector.broadcast %cst_16 : f32 to vector<8x256xf32>
    %23 = arith.maximumf %21, %22 : vector<8x256xf32>
    %c0_17 = arith.constant 0 : index
    %c0_18 = arith.constant 0 : index
    %24 = vector.load %arg8[%c0_17, %c0_18] : memref<256x128xf32, #tpu.memory_space<vmem>>, vector<256x128xf32>
    %cst_19 = arith.constant dense<0.000000e+00> : vector<8x128xf32>
    %25 = tpu.matmul %23, %24, %cst_19 {dimension_numbers = #tpu.dot_dimension_numbers<[1], [0], [0], [1], [0, 0, 1, 1], [], []>} : vector<8x256xf32>, vector<256x128xf32>, vector<8x128xf32> -> vector<8x128xf32>
    %c0_20 = arith.constant 0 : index
    %c0_21 = arith.constant 0 : index
    %26 = vector.load %arg9[%c0_20, %c0_21] : memref<1x128xf32, #tpu.memory_space<vmem>>, vector<1x128xf32>
    %27 = vector.broadcast %26 : vector<1x128xf32> to vector<8x128xf32>
    %28 = arith.addf %25, %27 : vector<8x128xf32>
    %c0_22 = arith.constant 0 : index
    %c0_23 = arith.constant 0 : index
    %29 = vector.load %arg10[%c0_22, %c0_23] : memref<8x128xf32, #tpu.memory_space<vmem>>, vector<8x128xf32>
    tpu.vector_store %arg10[%c0_22, %c0_23], %28 {strides = array<i32>} : memref<8x128xf32, #tpu.memory_space<vmem>>, vector<8x128xf32>,
    return
  }
  func.func @transform_0(%arg0: i32) -> (i32, i32) {
    %c0_i32 = arith.constant 0 : i32
    %c0_i32_0 = arith.constant 0 : i32
    return %arg0, %c0_i32 : i32, i32
  }
  func.func @transform_1(%arg0: i32) -> (i32, i32) {
    %c0_i32 = arith.constant 0 : i32
    %c0_i32_0 = arith.constant 0 : i32
    %c0_i32_1 = arith.constant 0 : i32
    return %c0_i32, %c0_i32_0 : i32, i32
  }
  func.func @transform_2(%arg0: i32) -> (i32, i32) {
    %c0_i32 = arith.constant 0 : i32
    %c0_i32_0 = arith.constant 0 : i32
    %c0_i32_1 = arith.constant 0 : i32
    return %c0_i32, %c0_i32_0 : i32, i32
  }
  func.func @transform_3(%arg0: i32) -> (i32, i32) {
    %c0_i32 = arith.constant 0 : i32
    %c0_i32_0 = arith.constant 0 : i32
    %c0_i32_1 = arith.constant 0 : i32
    return %c0_i32, %c0_i32_0 : i32, i32
  }
  func.func @transform_4(%arg0: i32) -> (i32, i32) {
    %c0_i32 = arith.constant 0 : i32
    %c0_i32_0 = arith.constant 0 : i32
    %c0_i32_1 = arith.constant 0 : i32
    return %c0_i32, %c0_i32_0 : i32, i32
  }
  func.func @transform_5(%arg0: i32) -> (i32, i32) {
    %c0_i32 = arith.constant 0 : i32
    %c0_i32_0 = arith.constant 0 : i32
    %c0_i32_1 = arith.constant 0 : i32
    return %c0_i32, %c0_i32_0 : i32, i32
  }
  func.func @transform_6(%arg0: i32) -> (i32, i32) {
    %c0_i32 = arith.constant 0 : i32
    %c0_i32_0 = arith.constant 0 : i32
    %c0_i32_1 = arith.constant 0 : i32
    return %c0_i32, %c0_i32_0 : i32, i32
  }
  func.func @transform_7(%arg0: i32) -> (i32, i32) {
    %c0_i32 = arith.constant 0 : i32
    %c0_i32_0 = arith.constant 0 : i32
    %c0_i32_1 = arith.constant 0 : i32
    return %c0_i32, %c0_i32_0 : i32, i32
  }
  func.func @transform_8(%arg0: i32) -> (i32, i32) {
    %c0_i32 = arith.constant 0 : i32
    %c0_i32_0 = arith.constant 0 : i32
    %c0_i32_1 = arith.constant 0 : i32
    return %c0_i32, %c0_i32_0 : i32, i32
  }
  func.func @transform_9(%arg0: i32) -> (i32, i32) {
    %c0_i32 = arith.constant 0 : i32
    %c0_i32_0 = arith.constant 0 : i32
    return %arg0, %c0_i32 : i32, i32
  }
}

</mosaic_0001>

<bundles_post_ra>
// kernel: tpu_custom_call.1
= control target key start
LH: loop header
LB: loop body
LE: loop exit
PB: predicated region body
PF: predicated region fallthrough
CT: control target
= control target key end

     0   :  { %14 = vsyncpa [#allocation3], 0  ;;  %s809_s0 = inlined_call_operand.vmem [shape: f32[8,1], index: 0, kind: input, shape index: {}]   ;;  %s810_s1 = inlined_call_operand.vmem [shape: f32[1,64], index: 1, kind: input, shape index: {}]   ;;  %s811_s2 = inlined_call_operand.vmem [shape: f32[1,64], index: 2, kind: input, shape index: {}]   ;;  %s812_s3 = inlined_call_operand.hbm [shape: f32[64,128], index: 3, kind: input, shape index: {}]   ;;  %s813_s4 = inlined_call_operand.vmem [shape: f32[1,128], index: 4, kind: input, shape index: {}]   ;;  %s814_s5 = inlined_call_operand.hbm [shape: f32[128,256], index: 5, kind: input, shape index: {}]   ;;  %s815_s6 = inlined_call_operand.vmem [shape: f32[1,256], index: 6, kind: input, shape index: {}]   ;;  %s816_s7 = inlined_call_operand.hbm [shape: f32[256,128], index: 7, kind: input, shape index: {}]   ;;  %s817_s8 = inlined_call_operand.vmem [shape: f32[1,128], index: 8, kind: input, shape index: {}]   ;;  %s818_s9 = inlined_call_operand.hbm [shape: f32[8,128], index: 9, kind: output, shape index: {}]  }
   0x1   :  { %15 = vsyncpa [#allocation6], 0 }
   0x2   :  { %16 = vsyncpa [#allocation4], 0  ;;  %s681_s30 = smov [#allocation5]   ;;  %s587_s13 = scalar_lea.hbm %s814_s5, 4096 }
   0x3   :  { %s42_s10 = sshll.u32 %s681_s30, 4  ;;  %p588_p0 = scmp.ne.s32.totalorder %s814_s5, %s587_s13  ;;  %s43_s10 = int_to_ptr.vmem [resolvable:$true] %s42_s10 }
   0x4   :  { %p591_p1 = scmp.lt.u32.totalorder %s587_s13, %s814_s5 }
   0x6   :  { %p593_p2 = pnand %p591_p1, %p588_p0 }
   0x8   :  { %596 = shalt.err (!%p593_p2)
}
   0x9   :  { %s597_s18 = scalar_lea.vmem %s43_s10, 4096  ;;  %p602_p4 = scmp.lt.s32.totalorder %s43_s10, %s43_s10 }
   0xa   :  { %p598_p3 = scmp.ne.s32.totalorder %s43_s10, %s597_s18  ;;  %p603_p5 = scmp.lt.s32.totalorder %s597_s18, %s597_s18 }
   0xc   :  { %p604_p6 = por %p603_p5, %p602_p4 }
   0xe   :  { %p605_p7 = pnand %p604_p6, %p598_p3 }
  0x10   :  { %608 = shalt.err (!%p605_p7)
}
  0x11   :  { %s682_s19 = smov 256   ;;  %s683_s20 = smov 16  }
  0x12   :  { %48 = dma.hbm_to_vmem [thread:$0]  %s814_s5, 4096, %s43_s10, [#allocation6], %s682_s19, %s682_s19, %s683_s20  }
  0x13   :  { %s684_s23 = smov [#allocation2]   ;;  %s609_s27 = scalar_lea.hbm %s812_s3, 1024 }
  0x14   :  { %s28_s24 = sshll.u32 %s684_s23, 4  ;;  %p610_p8 = scmp.ne.s32.totalorder %s812_s3, %s609_s27  ;;  %s29_s24 = int_to_ptr.vmem [resolvable:$true] %s28_s24 }
  0x15   :  { %p613_p9 = scmp.lt.u32.totalorder %s609_s27, %s812_s3 }
  0x17   :  { %p615_p10 = pnand %p613_p9, %p610_p8 }
  0x19   :  { %618 = shalt.err (!%p615_p10)
}
  0x1a   :  { %s619_s12 = scalar_lea.vmem %s29_s24, 1024  ;;  %p624_p12 = scmp.lt.s32.totalorder %s29_s24, %s29_s24 }
  0x1b   :  { %p620_p11 = scmp.ne.s32.totalorder %s29_s24, %s619_s12  ;;  %p625_p13 = scmp.lt.s32.totalorder %s619_s12, %s619_s12 }
  0x1d   :  { %p626_p0 = por %p625_p13, %p624_p12 }
  0x1f   :  { %p627_p1 = pnand %p626_p0, %p620_p11 }
  0x21   :  { %630 = shalt.err (!%p627_p1)
}
  0x22   :  { %s685_s5 = smov 128   ;;  %s686_s10 = smov 8  }
  0x23   :  { %34 = dma.hbm_to_vmem [thread:$0]  %s812_s3, 1024, %s29_s24, [#allocation3], %s685_s5, %s685_s5, %s686_s10  }
  0x24   :  { %s687_s15 = smov [#allocation7]   ;;  %s631_s19 = scalar_lea.hbm %s816_s7, 4096 }
  0x25   :  { %s56_s16 = sshll.u32 %s687_s15, 4  ;;  %p632_p2 = scmp.ne.s32.totalorder %s816_s7, %s631_s19  ;;  %s57_s16 = int_to_ptr.vmem [resolvable:$true] %s56_s16 }
  0x26   :  { %p635_p3 = scmp.lt.u32.totalorder %s631_s19, %s816_s7 }
  0x28   :  { %p637_p4 = pnand %p635_p3, %p632_p2 }
  0x2a   :  { %640 = shalt.err (!%p637_p4)
}
  0x2b   :  { %s641_s25 = scalar_lea.vmem %s57_s16, 4096  ;;  %p646_p6 = scmp.lt.s32.totalorder %s57_s16, %s57_s16 }
  0x2c   :  { %p642_p5 = scmp.ne.s32.totalorder %s57_s16, %s641_s25  ;;  %p647_p7 = scmp.lt.s32.totalorder %s641_s25, %s641_s25 }
  0x2e   :  { %p648_p8 = por %p647_p7, %p646_p6 }
  0x30   :  { %p649_p9 = pnand %p648_p8, %p642_p5 }
  0x32   :  { %652 = shalt.err (!%p649_p9)
}
  0x33   :  { %62 = dma.hbm_to_vmem [thread:$0]  %s816_s7, 4096, %s57_s16, [#allocation6], %s685_s5, %s685_s5, %s686_s10  }
  0x34   :  { %675 = dma.done.wait [#allocation3], 1024  }
  0x35   :  { %676 = vsyncadd [#allocation3], 4294966272 }
  0x36   :  { %677 = dma.done.wait [#allocation6], 8192  }
  0x37   :  { %678 = vsyncadd [#allocation6], 4294959104  ;;  %v688_v0 = vmov 0   ;;  %v689_v1 = vmov 0.0|0.0   ;;  %v74_v2 = vld [vmem:[%s809_s0] sm:$0xff]  ;;  %v97_v3 = vld [vmem:[#allocation2] sm:$0xff] }
  0x38   :  { %586 = vset.pattern.permute.xlu0 %v688_v0  ;;  %498 = vmatprep.subr.bf16.mxu0 %v689_v1  ;;  %v98_v4 = vld [vmem:[#allocation2 + $0x8] sm:$0xff]  ;;  %v99_v6 = vld [vmem:[#allocation2 + $0x10] sm:$0xff]  ;;  %v100_v7 = vld [vmem:[#allocation2 + $0x18] sm:$0xff]  ;;  %vm690_vm0 = vmmov 0   ;;  %v691_v13 = vmov 0.0   ;;  %vm112_vm1 = vcmask 523264  }
  0x39   :  { %78 = vperm.xlu0 %586, %v74_v2   ;;  %v499_v5 = vpack.c.bf16 %v98_v4, %v97_v3  ;;  %v502_v8 = vpack.c.bf16 %v100_v7, %v99_v6  ;;  %v101_v9 = vld [vmem:[#allocation2 + $0x20] sm:$0xff]  ;;  %v102_v10 = vld [vmem:[#allocation2 + $0x28] sm:$0xff]  ;;  %v103_v11 = vld [vmem:[#allocation2 + $0x30] sm:$0xff]  ;;  %495 = vmatprep.mubr.msk.f32.mxu0 %vm690_vm0, %v691_v13  ;;  %s692_s5 = smov [#allocation8]  }
  0x3a   :  { %v104_v12 = vld [vmem:[#allocation2 + $0x38] sm:$0xff]  ;;  %295 = vmatprep.mubr.f32.mxu1 %v691_v13  ;;  %v505_v14 = vpack.c.bf16 %v102_v10, %v101_v9  ;;  %v188_v15 = vld [vmem:[#allocation5 + $0x8] sm:$0xff]  ;;  %v187_v17 = vld [vmem:[#allocation5] sm:$0xff]  ;;  %s420_s10 = sshll.u32 %s692_s5, 4  ;;  %s421_s10 = int_to_ptr.vmem [resolvable:$true] %s420_s10 }
  0x3b   :  { %500 = vmatpush3.bf16.msra.mxu0 %v499_v5  ;;  %v190_v16 = vld [vmem:[#allocation5 + $0x18] sm:$0xff]  ;;  %v189_v19 = vld [vmem:[#allocation5 + $0x10] sm:$0xff]  ;;  %v192_v20 = vld [vmem:[#allocation5 + $0x28] sm:$0xff]  ;;  %v508_v28 = vpack.c.bf16 %v104_v12, %v103_v11  ;;  %p658_p11 = scmp.lt.s32.totalorder %s421_s10, %s421_s10 }
  0x3c   :  { %501 = vmatprep.subr.bf16.mxu0 %v689_v1  ;;  %v510_v18 = vpack.c.bf16 %v190_v16, %v188_v15  ;;  %v194_v21 = vld [vmem:[#allocation5 + $0x38] sm:$0xff]  ;;  %v512_v22 = vpack.c.bf16 %v189_v19, %v187_v17  ;;  %v191_v24 = vld [vmem:[#allocation5 + $0x20] sm:$0xff]  ;;  %v193_v25 = vld [vmem:[#allocation5 + $0x30] sm:$0xff] }
  0x3d   :  { %v514_v23 = vpack.c.bf16 %v194_v21, %v192_v20  ;;  %v196_v26 = vld [vmem:[#allocation5 + $0x48] sm:$0xff]  ;;  %v198_v27 = vld [vmem:[#allocation5 + $0x58] sm:$0xff]  ;;  %v516_v29 = vpack.c.bf16 %v193_v25, %v191_v24  ;;  %v195_v31 = vld [vmem:[#allocation5 + $0x40] sm:$0xff] }
  0x3e   :  { %511 = vmatprep.subr.bf16.mxu1 %v510_v18  ;;  %v518_v30 = vpack.c.bf16 %v198_v27, %v196_v26  ;;  %v197_v32 = vld [vmem:[#allocation5 + $0x50] sm:$0xff]  ;;  %v200_v33 = vld [vmem:[#allocation5 + $0x68] sm:$0xff]  ;;  %v202_v34 = vld [vmem:[#allocation5 + $0x78] sm:$0xff] }
  0x3f   :  { %503 = vmatpush3.bf16.msra.mxu0 %v502_v8  ;;  %513 = vmatpush1.bf16.msra.mxu1 %v512_v22  ;;  %v520_v35 = vpack.c.bf16 %v197_v32, %v195_v31  ;;  %v522_v36 = vpack.c.bf16 %v202_v34, %v200_v33  ;;  %v199_v37 = vld [vmem:[#allocation5 + $0x60] sm:$0xff]  ;;  %v201_v38 = vld [vmem:[#allocation5 + $0x70] sm:$0xff]  ;;  %v204_v39 = vld [vmem:[#allocation5 + $0x88] sm:$0xff] }
  0x40   :  { %504 = vmatprep.subr.bf16.mxu0 %v689_v1  ;;  %515 = vmatprep.subr.bf16.mxu1 %v514_v23  ;;  %v206_v40 = vld [vmem:[#allocation5 + $0x98] sm:$0xff]  ;;  %v524_v41 = vpack.c.bf16 %v201_v38, %v199_v37  ;;  %v203_v43 = vld [vmem:[#allocation5 + $0x80] sm:$0xff]  ;;  %v205_v44 = vld [vmem:[#allocation5 + $0x90] sm:$0xff] }
  0x41   :  { %v526_v42 = vpack.c.bf16 %v206_v40, %v204_v39  ;;  %v208_v45 = vld [vmem:[#allocation5 + $0xa8] sm:$0xff]  ;;  %v210_v46 = vld [vmem:[#allocation5 + $0xb8] sm:$0xff]  ;;  %v528_v47 = vpack.c.bf16 %v205_v44, %v203_v43  ;;  %v207_v49 = vld [vmem:[#allocation5 + $0xa0] sm:$0xff] }
  0x42   :  { %v530_v48 = vpack.c.bf16 %v210_v46, %v208_v45  ;;  %v209_v50 = vld [vmem:[#allocation5 + $0xb0] sm:$0xff]  ;;  %v212_v51 = vld [vmem:[#allocation5 + $0xc8] sm:$0xff]  ;;  %v214_v52 = vld [vmem:[#allocation5 + $0xd8] sm:$0xff] }
  0x43   :  { %506 = vmatpush3.bf16.msra.mxu0 %v505_v14  ;;  %517 = vmatpush1.bf16.msra.mxu1 %v516_v29  ;;  %v532_v53 = vpack.c.bf16 %v209_v50, %v207_v49  ;;  %v534_v54 = vpack.c.bf16 %v214_v52, %v212_v51  ;;  %v211_v55 = vld [vmem:[#allocation5 + $0xc0] sm:$0xff]  ;;  %v213_v56 = vld [vmem:[#allocation5 + $0xd0] sm:$0xff]  ;;  %v216_v0 = vld [vmem:[#allocation5 + $0xe8] sm:$0xff] }
  0x44   :  { %507 = vmatprep.subr.bf16.mxu0 %v689_v1  ;;  %519 = vmatprep.subr.bf16.mxu1 %v518_v30  ;;  %v536_v57 = vpack.c.bf16 %v213_v56, %v211_v55  ;;  %v430_v58 = vld [vmem:[%s810_s1] ss:$0 sm:$0xff]  ;;  %v218_v1 = vld [vmem:[#allocation5 + $0xf8] sm:$0xff]  ;;  %v215_v3 = vld [vmem:[#allocation5 + $0xe0] sm:$0xff] }
  0x45   :  { %v431_v59 = vld [vmem:[%s811_s2] ss:$0 sm:$0xff]  ;;  %v538_v2 = vpack.c.bf16 %v218_v1, %v216_v0  ;;  %v320_v6 = vld [vmem:[#allocation7 + $0x80] sm:$0xff]  ;;  %v321_v7 = vld [vmem:[#allocation7 + $0x88] sm:$0xff] }
  0x46   :  { %v217_v4 = vld [vmem:[#allocation5 + $0xf0] sm:$0xff]  ;;  %v304_v8 = vld [vmem:[#allocation7] sm:$0xff]  ;;  %v542_v9 = vpack.c.bf16 %v321_v7, %v320_v6  ;;  %v305_v10 = vld [vmem:[#allocation7 + $0x8] sm:$0xff] }
  0x47   :  { %509 = vmatpush3.bf16.msra.mxu0 %v508_v28  ;;  %521 = vmatpush1.bf16.msra.mxu1 %v520_v35  ;;  %v540_v5 = vpack.c.bf16 %v217_v4, %v215_v3  ;;  %v322_v11 = vld [vmem:[#allocation7 + $0x90] sm:$0xff]  ;;  %v323_v12 = vld [vmem:[#allocation7 + $0x98] sm:$0xff]  ;;  %v544_v13 = vpack.c.bf16 %v305_v10, %v304_v8  ;;  %v324_v17 = vld [vmem:[#allocation7 + $0xa0] sm:$0xff] }
  0x48   :  { %523 = vmatprep.subr.bf16.mxu1 %v522_v36  ;;  %v546_v14 = vpack.c.bf16 %v323_v12, %v322_v11  ;;  %v306_v15 = vld [vmem:[#allocation7 + $0x10] sm:$0xff]  ;;  %v307_v16 = vld [vmem:[#allocation7 + $0x18] sm:$0xff]  ;;  %543 = vmatprep.subr.bf16.mxu0 %v542_v9  ;;  %v325_v18 = vld [vmem:[#allocation7 + $0xa8] sm:$0xff] }
  0x49   :  { %v548_v19 = vpack.c.bf16 %v307_v16, %v306_v15  ;;  %v550_v20 = vpack.c.bf16 %v325_v18, %v324_v17  ;;  %v308_v21 = vld [vmem:[#allocation7 + $0x20] sm:$0xff]  ;;  %v309_v22 = vld [vmem:[#allocation7 + $0x28] sm:$0xff]  ;;  %v326_v23 = vld [vmem:[#allocation7 + $0xb0] sm:$0xff] }
  0x4a   :  { %v327_v24 = vld [vmem:[#allocation7 + $0xb8] sm:$0xff]  ;;  %v552_v25 = vpack.c.bf16 %v309_v22, %v308_v21  ;;  %v310_v27 = vld [vmem:[#allocation7 + $0x30] sm:$0xff]  ;;  %v328_v29 = vld [vmem:[#allocation7 + $0xc0] sm:$0xff] }
  0x4b   :  { %525 = vmatpush1.bf16.msra.mxu1 %v524_v41  ;;  %v554_v26 = vpack.c.bf16 %v327_v24, %v326_v23  ;;  %v311_v28 = vld [vmem:[#allocation7 + $0x38] sm:$0xff]  ;;  %v329_v30 = vld [vmem:[#allocation7 + $0xc8] sm:$0xff]  ;;  %v312_v33 = vld [vmem:[#allocation7 + $0x40] sm:$0xff] }
  0x4c   :  { %527 = vmatprep.subr.bf16.mxu1 %v526_v42  ;;  %v556_v31 = vpack.c.bf16 %v311_v28, %v310_v27  ;;  %v558_v32 = vpack.c.bf16 %v329_v30, %v328_v29  ;;  %v313_v34 = vld [vmem:[#allocation7 + $0x48] sm:$0xff]  ;;  %v330_v35 = vld [vmem:[#allocation7 + $0xd0] sm:$0xff]  ;;  %v331_v36 = vld [vmem:[#allocation7 + $0xd8] sm:$0xff] }
  0x4d   :  { %v560_v37 = vpack.c.bf16 %v313_v34, %v312_v33  ;;  %v562_v38 = vpack.c.bf16 %v331_v36, %v330_v35  ;;  %v314_v39 = vld [vmem:[#allocation7 + $0x50] sm:$0xff]  ;;  %v315_v40 = vld [vmem:[#allocation7 + $0x58] sm:$0xff]  ;;  %v332_v41 = vld [vmem:[#allocation7 + $0xe0] sm:$0xff] }
  0x4e   :  { %v333_v42 = vld [vmem:[#allocation7 + $0xe8] sm:$0xff]  ;;  %v564_v43 = vpack.c.bf16 %v315_v40, %v314_v39  ;;  %v432_v45 = vld [vmem:[%s813_s4] ss:$0 sm:$0xff]  ;;  %v316_v50 = vld [vmem:[#allocation7 + $0x60] sm:$0xff] }
  0x4f   :  { %529 = vmatpush1.bf16.msra.mxu1 %v528_v47  ;;  %v566_v44 = vpack.c.bf16 %v333_v42, %v332_v41  ;;  %v317_v51 = vld [vmem:[#allocation7 + $0x68] sm:$0xff]  ;;  %v318_v56 = vld [vmem:[#allocation7 + $0x70] sm:$0xff] }
  0x50   :  { %531 = vmatprep.subr.bf16.mxu1 %v530_v48  ;;  %v568_v52 = vpack.c.bf16 %v317_v51, %v316_v50  ;;  %v434_v9 = vld [vmem:[%s817_s8] ss:$0 sm:$0xff] }
  0x53   :  { %533 = vmatpush1.bf16.msra.mxu1 %v532_v53  ;;  %v334_v53 = vld [vmem:[#allocation7 + $0xf0] sm:$0xff] }
  0x54   :  { %535 = vmatprep.subr.bf16.mxu1 %v534_v54  ;;  %v335_v54 = vld [vmem:[#allocation7 + $0xf8] sm:$0xff] }
  0x55   :  { %v570_v55 = vpack.c.bf16 %v335_v54, %v334_v53 }
  0x57   :  { %537 = vmatpush1.bf16.msra.mxu1 %v536_v57  ;;  %v319_v57 = vld [vmem:[#allocation7 + $0x78] sm:$0xff] }
  0x58   :  { %539 = vmatprep.subr.bf16.mxu1 %v538_v2 }
  0x5b   :  { %541 = vmatpush1.bf16.msra.mxu1 %v540_v5 }
  0xb8   :  { %v79_v60 = vpop.permute.xlu0 %78 }
  0xb9   :  { %v87_v61 = vmul.f32 %v430_v58, %v79_v60  ;;  %v572_v58 = vpack.c.bf16 %v319_v57, %v318_v56 }
  0xbb   :  { %v95_v62 = vadd.f32 %v431_v59, %v87_v61  ;;  %v221_v59 = vlaneseq }
  0xbd   :  { %v96_v63 = vmax.f32 %v95_v62, 0.0  ;;  %v222_v60 = vshrl.u32 %v221_v59, 7  ;;  %v219_v62 = vld [vmem:[%s815_s6] sm:$0x3]  ;;  %s653_s6 = scalar_lea.vmem %s421_s10, 128 }
  0xbe   :  { %p654_p10 = scmp.ne.s32.totalorder %s421_s10, %s653_s6  ;;  %p659_p12 = scmp.lt.s32.totalorder %s653_s6, %s653_s6 }
  0xbf   :  { %496 = vmatmul.mubr.msk.f32.vlgmr.msra.gmra.mrb[0].mxu0 %vm112_vm1, %v96_v63  ;;  %v223_v61 = vsub.s32 0, %v222_v60  ;;  %v227_v63 = vsub.s32 1, %v222_v60 }
  0xc0   :  { %545 = vmatpush3.bf16.msra.mxu0 %v544_v13  ;;  %p660_p13 = por %p659_p12, %p658_p11 }
  0xc1   :  { %547 = vmatprep.subr.bf16.mxu0 %v546_v14  ;;  %v224_v0 = vrot.slane %v219_v62, %v223_v61  ;;  %v228_v1 = vrot.slane %v219_v62, %v227_v63 }
  0xc2   :  { %p661_p0 = pnand %p660_p13, %p654_p10 }
  0xc4   :  { %549 = vmatpush3.bf16.msra.mxu0 %v548_v19 }
  0xc5   :  { %551 = vmatprep.subr.bf16.mxu0 %v550_v20 }
  0xc8   :  { %553 = vmatpush3.bf16.msra.mxu0 %v552_v25 }
  0xc9   :  { %555 = vmatprep.subr.bf16.mxu0 %v554_v26 }
  0xcc   :  { %557 = vmatpush3.bf16.msra.mxu0 %v556_v31 }
  0xcd   :  { %559 = vmatprep.subr.bf16.mxu0 %v558_v32 }
  0xd0   :  { %561 = vmatpush3.bf16.msra.mxu0 %v560_v37 }
  0xd1   :  { %563 = vmatprep.subr.bf16.mxu0 %v562_v38 }
  0xd4   :  { %565 = vmatpush3.bf16.msra.mxu0 %v564_v43 }
  0xd5   :  { %567 = vmatprep.subr.bf16.mxu0 %v566_v44 }
  0xd8   :  { %569 = vmatpush3.bf16.msra.mxu0 %v568_v52 }
  0xd9   :  { %571 = vmatprep.subr.bf16.mxu0 %v570_v55 }
  0xdc   :  { %573 = vmatpush3.bf16.msra.mxu0 %v572_v58 }
 0x192   :  { %v182_v46 = vpop.f32.mrb[0].mxu0 }
 0x193   :  { %v183_v47 = vadd.f32 %v432_v45, %v182_v46  ;;  %v497_v48 = vpop.f32.mrb[1].mxu0 }
 0x195   :  { %v186_v49 = vmax.f32 %v183_v47, 0.0 }
 0x197   :  { %296 = vmatmul.mubr.f32.vlgmr.msra.gmra.mrb[0].mxu1 %v186_v49 }
 0x26a   :  { %v297_v2 = vpop.f32.mrb[0].mxu1 }
 0x26b   :  { %v298_v3 = vadd.f32 %v297_v2, %v224_v0  ;;  %v299_v4 = vpop.f32.mrb[1].mxu1 }
 0x26c   :  { %v300_v5 = vadd.f32 %v299_v4, %v228_v1 }
 0x26d   :  { %v302_v7 = vmax.f32 %v298_v3, 0.0 }
 0x26e   :  { %v303_v6 = vmax.f32 %v300_v5, 0.0 }
 0x270   :  { %407 = vmatprep.mubr.f32.mxu0 %v303_v6 }
 0x271   :  { %408 = vmatmul.mubr.f32.vlgmr.msra.gmra.mrb[2].mxu0 %v302_v7 }
 0x344   :  { %v476_v8 = vpop.f32.mrb[2].mxu0 }
 0x345   :  { %v477_v10 = vpop.f32.mrb[3].mxu0 }
 0x346   :  { %v478_v11 = vadd.f32 %v477_v10, %v476_v8 }
 0x348   :  { %v410_v12 = vadd.f32 %v478_v11, %v434_v9 }
 0x34a   :  { %413 = vst [vmem:[#allocation8] sm:$0xff] %v410_v12 }
 0x34b   :  { %664 = shalt.err (!%p661_p0)
}
 0x34c   :  { %s665_s15 = scalar_lea.hbm %s818_s9, 128 }
 0x34d   :  { %p666_p1 = scmp.ne.s32.totalorder %s818_s9, %s665_s15  ;;  %p669_p2 = scmp.lt.u32.totalorder %s665_s15, %s818_s9 }
 0x34f   :  { %p671_p3 = pnand %p669_p2, %p666_p1 }
 0x351   :  { %674 = shalt.err (!%p671_p3)
}
 0x352   :  { %423 = dma.vmem_to_hbm [thread:$0]  %s421_s10, 128, %s818_s9, [#allocation4]  }
 0x353   :  { %679 = dma.done.wait [#allocation4], 128  }
 0x354   :  { %680 = vsyncadd [#allocation4], 4294967168 }
 0x355   :  { %427 = vsyncpa [#allocation3], 1 }
 0x356   :  { %428 = vsyncpa [#allocation6], 1 }
 0x357   :  { %429 = vsyncpa [#allocation4], 1 }

</bundles_post_ra>
